<compile_context>
chip_gen: v5e
topology: v5e:2x2
jax: 0.10.0
libtpu: 0.0.40
codegen_flags: <defaults>
</compile_context>

<pallas_src>
import functools

import jax
import jax.numpy as jnp
from jax.experimental import pallas as pl
from jax.experimental.pallas import tpu as pltpu

_LANES = 128
_MAX_TILE_ROWS = 2048          # rows per tile (multiple of 8)
_STEP_BYTE_BUDGET = 8 << 20    # streamed bytes per grid step (one buffer set)
_NUM_PAR_CHUNKS = 2            # outer "parallel" chunks (v7x: one per TensorCore)


def _round_up(x, m):
    return (x + m - 1) // m * m


def _loss_kernel(tsdf_ref, psdf_ref, wdf_ref, wn_ref, tn_ref, pn_ref,
                 out_ref, acc_ref, *, tile_rows, blocks_per_chunk, rows_valid):
    p = pl.program_id(0)
    t = pl.program_id(1)
    f32 = jnp.float32

    @pl.when(t == 0)
    def _init():
        acc_ref[...] = jnp.zeros_like(acc_ref)

    # --- SDF term: weight_df * |pred - target|, (B, TR, 128) ---
    err = wdf_ref[...].astype(f32) * jnp.abs(
        psdf_ref[...].astype(f32) - tsdf_ref[...].astype(f32))

    # --- normals term: weight_n * sum_c |pred_n - target_n| ---
    n_ch = tn_ref.shape[1]
    ch_sum = jnp.abs(pn_ref[:, 0].astype(f32) - tn_ref[:, 0].astype(f32))
    for c in range(1, n_ch):  # static loop over channel slabs -> VALU adds
        ch_sum = ch_sum + jnp.abs(
            pn_ref[:, c].astype(f32) - tn_ref[:, c].astype(f32))
    err = err + wn_ref[...].astype(f32) * ch_sum

    # Fold the batch axis (leading, non-tiled) -> (TR, 128): B-1 vector adds.
    err = jnp.sum(err, axis=0)

    # Mask rows past the real data: the tail tile (and any clamped duplicate
    # block of the last parallel chunk) may hold garbage / duplicate rows, so
    # zero their contribution before accumulating.
    row0 = (p * blocks_per_chunk + t) * tile_rows
    row_ids = row0 + jax.lax.broadcasted_iota(jnp.int32, (tile_rows, _LANES), 0)
    err = jnp.where(row_ids < rows_valid, err, 0.0)

    acc_ref[...] += err

    @pl.when(t == blocks_per_chunk - 1)
    def _finalize():
        out_ref[...] = jnp.zeros(out_ref.shape, f32) + jnp.sum(acc_ref[...])


def shape_completion_loss(target_sdf, pred_sdf, target_normals, pred_normals,
                          weight_df, weight_normals, mu, logvar):
    """All inputs in PyTorch NCHW convention; latents are [B, Z]."""
    B, C, H, W = target_normals.shape
    hw = H * W
    n_true = B * hw  # denominator shared by both means in the reference

    rows = pl.cdiv(hw, _LANES)
    hw_pad = rows * _LANES - hw  # lane remainder only (0 when H*W % 128 == 0)

    def plane(x):  # (B, 1, H, W) -> (B, rows, 128), native dtype
        x = x.reshape(B, hw)
        if hw_pad:
            x = jnp.pad(x, ((0, 0), (0, hw_pad)))
        return x.reshape(B, rows, _LANES)

    def chans(x):  # (B, C, H, W) -> (B, C, rows, 128), native dtype
        x = x.reshape(B, C, hw)
        if hw_pad:
            x = jnp.pad(x, ((0, 0), (0, 0), (0, hw_pad)))
        return x.reshape(B, C, rows, _LANES)

    tsdf, psdf = plane(target_sdf), plane(pred_sdf)
    wdf, wn = plane(weight_df), plane(weight_normals)
    tn, pn = chans(target_normals), chans(pred_normals)

    # Tile size: as large as possible (multiple of 8 rows), capped by a
    # per-step streamed-byte budget and by the data itself; keep >= 2 blocks
    # when there is enough data so both parallel chunks get work (v7x).
    bytes_per_row = B * _LANES * (
        tsdf.dtype.itemsize + psdf.dtype.itemsize
        + wdf.dtype.itemsize + wn.dtype.itemsize
        + C * (tn.dtype.itemsize + pn.dtype.itemsize))
    tile_by_mem = max(8, (_STEP_BYTE_BUDGET // bytes_per_row) // 8 * 8)
    tile_rows = min(_MAX_TILE_ROWS, _round_up(rows, 8), tile_by_mem)
    if rows >= 16:
        tile_rows = min(tile_rows, _round_up(pl.cdiv(rows, 2), 8))
    tile_rows = max(8, (tile_rows // 8) * 8)

    total_blocks = pl.cdiv(rows, tile_rows)
    n_par = _NUM_PAR_CHUNKS if total_blocks >= _NUM_PAR_CHUNKS else 1
    blocks_per_chunk = pl.cdiv(total_blocks, n_par)

    def row_block(p, t):
        # Clamp so no DMA starts past the array; clamped duplicate blocks are
        # fully masked inside the kernel, so they contribute nothing.
        return jnp.minimum(p * blocks_per_chunk + t, total_blocks - 1)

    plane_spec = pl.BlockSpec((B, tile_rows, _LANES),
                              lambda p, t: (0, row_block(p, t), 0))
    chan_spec = pl.BlockSpec((B, C, tile_rows, _LANES),
                             lambda p, t: (0, 0, row_block(p, t), 0))
    out_spec = pl.BlockSpec((1, 1, _LANES), lambda p, t: (p, 0, 0))

    # VMEM budget: double-buffered streamed tiles + f32 elementwise temporaries
    # + accumulator + output double-buffers + compiler-internal slack.
    tile_elems = tile_rows * _LANES
    step_bytes = bytes_per_row * tile_rows
    temp_bytes = 6 * B * tile_elems * 4
    vmem_bytes = int(2 * step_bytes + temp_bytes + 4 * tile_elems
                     + 2 * 4 * _LANES + (4 << 20))

    kernel = functools.partial(_loss_kernel, tile_rows=tile_rows,
                               blocks_per_chunk=blocks_per_chunk,
                               rows_valid=rows)

    partials = pl.pallas_call(
        kernel,
        out_shape=jax.ShapeDtypeStruct((n_par, 1, _LANES), jnp.float32),
        grid_spec=pltpu.PrefetchScalarGridSpec(
            num_scalar_prefetch=0,
            grid=(n_par, blocks_per_chunk),
            in_specs=[plane_spec, plane_spec, plane_spec, plane_spec,
                      chan_spec, chan_spec],
            out_specs=out_spec,
            scratch_shapes=[pltpu.VMEM((tile_rows, _LANES), jnp.float32)],
        ),
        compiler_params=pltpu.CompilerParams(
            dimension_semantics=("parallel", "arbitrary"),
            vmem_limit_bytes=vmem_bytes),
    )(tsdf, psdf, wdf, wn, tn, pn)

    pixel = jnp.sum(partials[:, 0, 0]) / jnp.float32(n_true)

    # KL divergence over the tiny (B, Z) latents stays in plain JAX (per review).
    mu32 = mu.astype(jnp.float32)
    lv32 = logvar.astype(jnp.float32)
    kld = -0.5 * jnp.sum(1.0 + lv32 - mu32 * mu32 - jnp.exp(lv32))
    return pixel + kld


def _reference(target_sdf, pred_sdf, target_normals, pred_normals,
               weight_df, weight_normals, mu, logvar):
    l1 = jnp.mean(weight_df * jnp.abs(pred_sdf - target_sdf))
    summed = jnp.sum(jnp.abs(pred_normals - target_normals), axis=1,
                     keepdims=True)
    l2 = jnp.mean(weight_normals * summed)
    kld = -0.5 * jnp.sum(1.0 + logvar - mu ** 2 - jnp.exp(logvar))
    return l1 + l2 + kld


if __name__ == "__main__":
    key = jax.random.PRNGKey(0)
    B, C, H, W, Z = 2, 3, 16, 16, 32
    ks = jax.random.split(key, 8)

    target_sdf = jax.random.normal(ks[0], (B, 1, H, W), jnp.float32)
    pred_sdf = jax.random.normal(ks[1], (B, 1, H, W), jnp.float32)
    target_normals = jax.random.normal(ks[2], (B, C, H, W), jnp.float32)
    pred_normals = jax.random.normal(ks[3], (B, C, H, W), jnp.float32)
    weight_df = jax.random.uniform(ks[4], (B, 1, H, W), jnp.float32)
    weight_normals = jax.random.uniform(ks[5], (B, 1, H, W), jnp.float32)
    mu = 0.1 * jax.random.normal(ks[6], (B, Z), jnp.float32)
    logvar = 0.1 * jax.random.normal(ks[7], (B, Z), jnp.float32)

    loss = shape_completion_loss(target_sdf, pred_sdf, target_normals,
                                 pred_normals, weight_df, weight_normals,
                                 mu, logvar)
    loss = jax.block_until_ready(loss)

    ref = _reference(target_sdf, pred_sdf, target_normals, pred_normals,
                     weight_df, weight_normals, mu, logvar)
    assert jnp.allclose(loss, ref, rtol=1e-5, atol=1e-4), (loss, ref)

    print("KERNEL_OK")
</pallas_src>

<mosaic_0001>
module attributes {stable_mosaic.version = 11 : i64} {
  func.func @_loss_kernel(%arg0: i32, %arg1: i32, %arg2: memref<2x8x128xf32, #tpu.memory_space<vmem>>, %arg3: memref<2x8x128xf32, #tpu.memory_space<vmem>>, %arg4: memref<2x8x128xf32, #tpu.memory_space<vmem>>, %arg5: memref<2x8x128xf32, #tpu.memory_space<vmem>>, %arg6: memref<2x3x8x128xf32, #tpu.memory_space<vmem>>, %arg7: memref<2x3x8x128xf32, #tpu.memory_space<vmem>>, %arg8: memref<1x1x128xf32, #tpu.memory_space<vmem>>, %arg9: memref<8x128xf32, #tpu.memory_space<vmem>>) attributes {dimension_semantics = [#tpu.dimension_semantics<parallel>, #tpu.dimension_semantics<arbitrary>], iteration_bounds = array<i64: 1, 1>, scalar_prefetch = 0 : i64, scratch_operands = 1 : i64, tpu.core_type = #tpu.core_type<tc>, window_params = [{transform_indices = @transform_0, window_bounds = array<i64: 2, 8, 128>}, {transform_indices = @transform_1, window_bounds = array<i64: 2, 8, 128>}, {transform_indices = @transform_2, window_bounds = array<i64: 2, 8, 128>}, {transform_indices = @transform_3, window_bounds = array<i64: 2, 8, 128>}, {transform_indices = @transform_4, window_bounds = array<i64: 2, 3, 8, 128>}, {transform_indices = @transform_5, window_bounds = array<i64: 2, 3, 8, 128>}, {transform_indices = @transform_6, window_bounds = array<i64: 1, 1, 128>}]} {
    %c0_i32 = arith.constant 0 : i32
    %0 = arith.cmpi eq, %arg1, %c0_i32 : i32
    %1 = arith.extui %0 : i1 to i32
    %c0_i32_0 = arith.constant 0 : i32
    %2 = arith.cmpi ne, %1, %c0_i32_0 : i32
    scf.if %2 {
      %cst_41 = arith.constant 0.000000e+00 : f32
      %49 = vector.broadcast %cst_41 : f32 to vector<8x128xf32>
      %c0_42 = arith.constant 0 : index
      %c0_43 = arith.constant 0 : index
      %50 = vector.load %arg9[%c0_42, %c0_43] : memref<8x128xf32, #tpu.memory_space<vmem>>, vector<8x128xf32>
      tpu.vector_store %arg9[%c0_42, %c0_43], %49 {strides = array<i32>} : memref<8x128xf32, #tpu.memory_space<vmem>>, vector<8x128xf32>,
    } else {
    }
    %c0 = arith.constant 0 : index
    %c0_1 = arith.constant 0 : index
    %c0_2 = arith.constant 0 : index
    %3 = vector.load %arg4[%c0, %c0_1, %c0_2] : memref<2x8x128xf32, #tpu.memory_space<vmem>>, vector<2x8x128xf32>
    %c0_3 = arith.constant 0 : index
    %c0_4 = arith.constant 0 : index
    %c0_5 = arith.constant 0 : index
    %4 = vector.load %arg3[%c0_3, %c0_4, %c0_5] : memref<2x8x128xf32, #tpu.memory_space<vmem>>, vector<2x8x128xf32>
    %c0_6 = arith.constant 0 : index
    %c0_7 = arith.constant 0 : index
    %c0_8 = arith.constant 0 : index
    %5 = vector.load %arg2[%c0_6, %c0_7, %c0_8] : memref<2x8x128xf32, #tpu.memory_space<vmem>>, vector<2x8x128xf32>
    %6 = arith.subf %4, %5 : vector<2x8x128xf32>
    %7 = math.absf %6 : vector<2x8x128xf32>
    %8 = arith.mulf %3, %7 : vector<2x8x128xf32>
    %c0_9 = arith.constant 0 : index
    %c0_10 = arith.constant 0 : index
    %c0_11 = arith.constant 0 : index
    %c0_12 = arith.constant 0 : index
    %9 = vector.load %arg7[%c0_9, %c0_10, %c0_11, %c0_12] : memref<2x3x8x128xf32, #tpu.memory_space<vmem>>, vector<2x1x8x128xf32>
    %10 = vector.shape_cast %9 : vector<2x1x8x128xf32> to vector<2x8x128xf32>
    %c0_13 = arith.constant 0 : index
    %c0_14 = arith.constant 0 : index
    %c0_15 = arith.constant 0 : index
    %c0_16 = arith.constant 0 : index
    %11 = vector.load %arg6[%c0_13, %c0_14, %c0_15, %c0_16] : memref<2x3x8x128xf32, #tpu.memory_space<vmem>>, vector<2x1x8x128xf32>
    %12 = vector.shape_cast %11 : vector<2x1x8x128xf32> to vector<2x8x128xf32>
    %13 = arith.subf %10, %12 : vector<2x8x128xf32>
    %14 = math.absf %13 : vector<2x8x128xf32>
    %c0_17 = arith.constant 0 : index
    %c1 = arith.constant 1 : index
    %c0_18 = arith.constant 0 : index
    %c0_19 = arith.constant 0 : index
    %15 = vector.load %arg7[%c0_17, %c1, %c0_18, %c0_19] : memref<2x3x8x128xf32, #tpu.memory_space<vmem>>, vector<2x1x8x128xf32>
    %16 = vector.shape_cast %15 : vector<2x1x8x128xf32> to vector<2x8x128xf32>
    %c0_20 = arith.constant 0 : index
    %c1_21 = arith.constant 1 : index
    %c0_22 = arith.constant 0 : index
    %c0_23 = arith.constant 0 : index
    %17 = vector.load %arg6[%c0_20, %c1_21, %c0_22, %c0_23] : memref<2x3x8x128xf32, #tpu.memory_space<vmem>>, vector<2x1x8x128xf32>
    %18 = vector.shape_cast %17 : vector<2x1x8x128xf32> to vector<2x8x128xf32>
    %19 = arith.subf %16, %18 : vector<2x8x128xf32>
    %20 = math.absf %19 : vector<2x8x128xf32>
    %21 = arith.addf %14, %20 : vector<2x8x128xf32>
    %c0_24 = arith.constant 0 : index
    %c2 = arith.constant 2 : index
    %c0_25 = arith.constant 0 : index
    %c0_26 = arith.constant 0 : index
    %22 = vector.load %arg7[%c0_24, %c2, %c0_25, %c0_26] : memref<2x3x8x128xf32, #tpu.memory_space<vmem>>, vector<2x1x8x128xf32>
    %23 = vector.shape_cast %22 : vector<2x1x8x128xf32> to vector<2x8x128xf32>
    %c0_27 = arith.constant 0 : index
    %c2_28 = arith.constant 2 : index
    %c0_29 = arith.constant 0 : index
    %c0_30 = arith.constant 0 : index
    %24 = vector.load %arg6[%c0_27, %c2_28, %c0_29, %c0_30] : memref<2x3x8x128xf32, #tpu.memory_space<vmem>>, vector<2x1x8x128xf32>
    %25 = vector.shape_cast %24 : vector<2x1x8x128xf32> to vector<2x8x128xf32>
    %26 = arith.subf %23, %25 : vector<2x8x128xf32>
    %27 = math.absf %26 : vector<2x8x128xf32>
    %28 = arith.addf %21, %27 : vector<2x8x128xf32>
    %c0_31 = arith.constant 0 : index
    %c0_32 = arith.constant 0 : index
    %c0_33 = arith.constant 0 : index
    %29 = vector.load %arg5[%c0_31, %c0_32, %c0_33] : memref<2x8x128xf32, #tpu.memory_space<vmem>>, vector<2x8x128xf32>
    %30 = arith.mulf %29, %28 : vector<2x8x128xf32>
    %31 = arith.addf %8, %30 : vector<2x8x128xf32>
    %cst = arith.constant dense<0.000000e+00> : vector<8x128xf32>
    %32 = vector.multi_reduction <add>, %31, %cst [0] : vector<2x8x128xf32> to vector<8x128xf32>
    %c1_i32 = arith.constant 1 : i32
    %33 = arith.muli %arg0, %c1_i32 : i32
    %34 = arith.addi %33, %arg1 : i32
    %c8_i32 = arith.constant 8 : i32
    %35 = arith.muli %34, %c8_i32 : i32
    %36 = tpu.iota {dimensions = array<i32: 0>} : vector<8x128xi32>
    %37 = vector.broadcast %35 : i32 to vector<8x128xi32>
    %38 = arith.addi %37, %36 : vector<8x128xi32>
    %c2_i32 = arith.constant 2 : i32
    %39 = vector.broadcast %c2_i32 : i32 to vector<8x128xi32>
    %40 = arith.cmpi slt, %38, %39 : vector<8x128xi32>
    %cst_34 = arith.constant 0.000000e+00 : f32
    %41 = vector.broadcast %cst_34 : f32 to vector<8x128xf32>
    %42 = arith.select %40, %32, %41 : vector<8x128xi1>, vector<8x128xf32>
    %c0_35 = arith.constant 0 : index
    %c0_36 = arith.constant 0 : index
    %43 = vector.load %arg9[%c0_35, %c0_36] : memref<8x128xf32, #tpu.memory_space<vmem>>, vector<8x128xf32>
    %44 = arith.addf %43, %42 : vector<8x128xf32>
    %c0_37 = arith.constant 0 : index
    %c0_38 = arith.constant 0 : index
    %45 = vector.load %arg9[%c0_37, %c0_38] : memref<8x128xf32, #tpu.memory_space<vmem>>, vector<8x128xf32>
    tpu.vector_store %arg9[%c0_37, %c0_38], %44 {strides = array<i32>} : memref<8x128xf32, #tpu.memory_space<vmem>>, vector<8x128xf32>,
    %c0_i32_39 = arith.constant 0 : i32
    %46 = arith.cmpi eq, %arg1, %c0_i32_39 : i32
    %47 = arith.extui %46 : i1 to i32
    %c0_i32_40 = arith.constant 0 : i32
    %48 = arith.cmpi ne, %47, %c0_i32_40 : i32
    scf.if %48 {
      %cst_41 = arith.constant 0.000000e+00 : f32
      %49 = vector.broadcast %cst_41 : f32 to vector<1x1x128xf32>
      %c0_42 = arith.constant 0 : index
      %c0_43 = arith.constant 0 : index
      %50 = vector.load %arg9[%c0_42, %c0_43] : memref<8x128xf32, #tpu.memory_space<vmem>>, vector<8x128xf32>
      %51 = vector.shape_cast %50 : vector<8x128xf32> to vector<1x8x128xf32>
      %cst_44 = arith.constant dense<0.000000e+00> : vector<1xf32>
      %52 = vector.multi_reduction <add>, %51, %cst_44 [1, 2] : vector<1x8x128xf32> to vector<1xf32>
      %53 = vector.shape_cast %52 : vector<1xf32> to vector<1x1x1xf32>
      %54 = vector.extract %53[0, 0, 0] : f32 from vector<1x1x1xf32>
      %55 = vector.broadcast %54 : f32 to vector<1x1x128xf32>
      %56 = arith.addf %49, %55 : vector<1x1x128xf32>
      %c0_45 = arith.constant 0 : index
      %c0_46 = arith.constant 0 : index
      %c0_47 = arith.constant 0 : index
      %57 = vector.load %arg8[%c0_45, %c0_46, %c0_47] : memref<1x1x128xf32, #tpu.memory_space<vmem>>, vector<1x1x128xf32>
      tpu.vector_store %arg8[%c0_45, %c0_46, %c0_47], %56 {strides = array<i32>} : memref<1x1x128xf32, #tpu.memory_space<vmem>>, vector<1x1x128xf32>,
    } else {
    }
    return
  }
  func.func @transform_0(%arg0: i32, %arg1: i32) -> (i32, i32, i32) {
    %c1_i32 = arith.constant 1 : i32
    %0 = arith.muli %arg0, %c1_i32 : i32
    %1 = arith.addi %0, %arg1 : i32
    %c0_i32 = arith.constant 0 : i32
    %2 = arith.minsi %1, %c0_i32 : i32
    %c0_i32_0 = arith.constant 0 : i32
    %c0_i32_1 = arith.constant 0 : i32
    %c0_i32_2 = arith.constant 0 : i32
    return %c0_i32_0, %2, %c0_i32_1 : i32, i32, i32
  }
  func.func @transform_1(%arg0: i32, %arg1: i32) -> (i32, i32, i32) {
    %c1_i32 = arith.constant 1 : i32
    %0 = arith.muli %arg0, %c1_i32 : i32
    %1 = arith.addi %0, %arg1 : i32
    %c0_i32 = arith.constant 0 : i32
    %2 = arith.minsi %1, %c0_i32 : i32
    %c0_i32_0 = arith.constant 0 : i32
    %c0_i32_1 = arith.constant 0 : i32
    %c0_i32_2 = arith.constant 0 : i32
    return %c0_i32_0, %2, %c0_i32_1 : i32, i32, i32
  }
  func.func @transform_2(%arg0: i32, %arg1: i32) -> (i32, i32, i32) {
    %c1_i32 = arith.constant 1 : i32
    %0 = arith.muli %arg0, %c1_i32 : i32
    %1 = arith.addi %0, %arg1 : i32
    %c0_i32 = arith.constant 0 : i32
    %2 = arith.minsi %1, %c0_i32 : i32
    %c0_i32_0 = arith.constant 0 : i32
    %c0_i32_1 = arith.constant 0 : i32
    %c0_i32_2 = arith.constant 0 : i32
    return %c0_i32_0, %2, %c0_i32_1 : i32, i32, i32
  }
  func.func @transform_3(%arg0: i32, %arg1: i32) -> (i32, i32, i32) {
    %c1_i32 = arith.constant 1 : i32
    %0 = arith.muli %arg0, %c1_i32 : i32
    %1 = arith.addi %0, %arg1 : i32
    %c0_i32 = arith.constant 0 : i32
    %2 = arith.minsi %1, %c0_i32 : i32
    %c0_i32_0 = arith.constant 0 : i32
    %c0_i32_1 = arith.constant 0 : i32
    %c0_i32_2 = arith.constant 0 : i32
    return %c0_i32_0, %2, %c0_i32_1 : i32, i32, i32
  }
  func.func @transform_4(%arg0: i32, %arg1: i32) -> (i32, i32, i32, i32) {
    %c1_i32 = arith.constant 1 : i32
    %0 = arith.muli %arg0, %c1_i32 : i32
    %1 = arith.addi %0, %arg1 : i32
    %c0_i32 = arith.constant 0 : i32
    %2 = arith.minsi %1, %c0_i32 : i32
    %c0_i32_0 = arith.constant 0 : i32
    %c0_i32_1 = arith.constant 0 : i32
    %c0_i32_2 = arith.constant 0 : i32
    %c0_i32_3 = arith.constant 0 : i32
    return %c0_i32_0, %c0_i32_1, %2, %c0_i32_2 : i32, i32, i32, i32
  }
  func.func @transform_5(%arg0: i32, %arg1: i32) -> (i32, i32, i32, i32) {
    %c1_i32 = arith.constant 1 : i32
    %0 = arith.muli %arg0, %c1_i32 : i32
    %1 = arith.addi %0, %arg1 : i32
    %c0_i32 = arith.constant 0 : i32
    %2 = arith.minsi %1, %c0_i32 : i32
    %c0_i32_0 = arith.constant 0 : i32
    %c0_i32_1 = arith.constant 0 : i32
    %c0_i32_2 = arith.constant 0 : i32
    %c0_i32_3 = arith.constant 0 : i32
    return %c0_i32_0, %c0_i32_1, %2, %c0_i32_2 : i32, i32, i32, i32
  }
  func.func @transform_6(%arg0: i32, %arg1: i32) -> (i32, i32, i32) {
    %c0_i32 = arith.constant 0 : i32
    %c0_i32_0 = arith.constant 0 : i32
    %c0_i32_1 = arith.constant 0 : i32
    return %arg0, %c0_i32, %c0_i32_0 : i32, i32, i32
  }
}

</mosaic_0001>

<bundles_post_ra>
// kernel: tpu_custom_call.1
= control target key start
LH: loop header
LB: loop body
LE: loop exit
PB: predicated region body
PF: predicated region fallthrough
CT: control target
= control target key end

     0   :  { %11 = vsyncpa [#allocation4], 0  ;;  %s681_s0 = inlined_call_operand.hbm [shape: f32[2,2,128], index: 0, kind: input, shape index: {}]   ;;  %s682_s1 = inlined_call_operand.hbm [shape: f32[2,2,128], index: 1, kind: input, shape index: {}]   ;;  %s683_s2 = inlined_call_operand.hbm [shape: f32[2,2,128], index: 2, kind: input, shape index: {}]   ;;  %s684_s3 = inlined_call_operand.hbm [shape: f32[2,2,128], index: 3, kind: input, shape index: {}]   ;;  %s685_s4 = inlined_call_operand.hbm [shape: f32[2,3,2,128], index: 4, kind: input, shape index: {}]   ;;  %s686_s5 = inlined_call_operand.hbm [shape: f32[2,3,2,128], index: 5, kind: input, shape index: {}]   ;;  %s687_s6 = inlined_call_operand.hbm [shape: f32[1,1,128], index: 6, kind: output, shape index: {}]  }
   0x1   :  { %12 = vsyncpa [#allocation7], 0 }
   0x2   :  { %13 = vsyncpa [#allocation10], 0 }
   0x3   :  { %14 = vsyncpa [#allocation13], 0 }
   0x4   :  { %15 = vsyncpa [#allocation5], 0 }
   0x5   :  { %26 = vsyncadd [#allocation4], 192  ;;  %s36_s21 = sld [smem:[#allocation0]]   ;;  %s44_s24 = sshll.u32 %s681_s0, 4  ;;  %s45_s24 = int_to_ptr.hbm [resolvable:$true] %s44_s24 }
   0x6   :  { %s582_s25 = smov [#allocation3]   ;;  %s583_s27 = smov 32  }
   0x7   :  { %s46_s26 = sshll.u32 %s582_s25, 4  ;;  %53 = sst [smem:[#allocation16]] %s583_s27  ;;  %s47_s26 = int_to_ptr.vmem [resolvable:$true] %s46_s26 }
   0x8   :  { %s584_s28 = smov 128   ;;  %s585_s30 = smov 1  }
   0x9   :  { %55 = sst [smem:[#allocation16 + $0x1]] %s584_s28  ;;  %s586_s8 = smov 2  }
   0xa   :  { %57 = sst [smem:[#allocation16 + $0x2]] %s585_s30  ;;  %s587_s9 = smov [#allocation4]  }
   0xb   :  { %s491_s29 = sshll.u32 %s36_s21, 26  ;;  %59 = sst [smem:[#allocation16 + $0x3]] %s583_s27 }
   0xc   :  { %s492_s7 = sadd.s32 134217728, %s491_s29  ;;  %61 = sst [smem:[#allocation16 + $0x4]] %s583_s27 }
   0xd   :  { %63 = sst [smem:[#allocation16 + $0x5]] %s586_s8  ;;  %s588_s10 = smov [#allocation15]  }
   0xe   :  { %65 = dma.general %s45_s24, 64, %s47_s26, %s587_s9, %s588_s10, [#allocation16], %s492_s7, 0  }
   0xf   :  { %76 = vsyncadd [#allocation7], 192  ;;  %s86_s0 = sld [smem:[#allocation0]]   ;;  %s94_s13 = sshll.u32 %s682_s1, 4  ;;  %s95_s13 = int_to_ptr.hbm [resolvable:$true] %s94_s13 }
  0x10   :  { %s589_s14 = smov [#allocation6]   ;;  %s590_s16 = smov 32  }
  0x11   :  { %s96_s15 = sshll.u32 %s589_s14, 4  ;;  %103 = sst [smem:[#allocation18]] %s590_s16  ;;  %s97_s15 = int_to_ptr.vmem [resolvable:$true] %s96_s15 }
  0x12   :  { %s591_s17 = smov 128   ;;  %s592_s19 = smov 1  }
  0x13   :  { %105 = sst [smem:[#allocation18 + $0x1]] %s591_s17  ;;  %s593_s21 = smov 2  }
  0x14   :  { %107 = sst [smem:[#allocation18 + $0x2]] %s592_s19  ;;  %s594_s22 = smov [#allocation7]  }
  0x15   :  { %s493_s18 = sshll.u32 %s86_s0, 26  ;;  %109 = sst [smem:[#allocation18 + $0x3]] %s590_s16 }
  0x16   :  { %s494_s20 = sadd.s32 134217728, %s493_s18  ;;  %111 = sst [smem:[#allocation18 + $0x4]] %s590_s16 }
  0x17   :  { %113 = sst [smem:[#allocation18 + $0x5]] %s593_s21  ;;  %s595_s23 = smov [#allocation17]  }
  0x18   :  { %115 = dma.general %s95_s13, 64, %s97_s15, %s594_s22, %s595_s23, [#allocation18], %s494_s20, 0  }
  0x19   :  { %126 = vsyncadd [#allocation7], 192  ;;  %s136_s1 = sld [smem:[#allocation0]]   ;;  %s144_s26 = sshll.u32 %s683_s2, 4  ;;  %s145_s26 = int_to_ptr.hbm [resolvable:$true] %s144_s26 }
  0x1a   :  { %s596_s27 = smov [#allocation8]   ;;  %s597_s29 = smov 32  }
  0x1b   :  { %s146_s28 = sshll.u32 %s596_s27, 4  ;;  %153 = sst [smem:[#allocation20]] %s597_s29  ;;  %s147_s28 = int_to_ptr.vmem [resolvable:$true] %s146_s28 }
  0x1c   :  { %s598_s30 = smov 128   ;;  %s599_s8 = smov 1  }
  0x1d   :  { %155 = sst [smem:[#allocation20 + $0x1]] %s598_s30  ;;  %s600_s10 = smov 2  }
  0x1e   :  { %157 = sst [smem:[#allocation20 + $0x2]] %s599_s8  ;;  %s601_s0 = smov [#allocation7]  }
  0x1f   :  { %s495_s7 = sshll.u32 %s136_s1, 26  ;;  %159 = sst [smem:[#allocation20 + $0x3]] %s597_s29 }
  0x20   :  { %s496_s9 = sadd.s32 134217728, %s495_s7  ;;  %161 = sst [smem:[#allocation20 + $0x4]] %s597_s29 }
  0x21   :  { %163 = sst [smem:[#allocation20 + $0x5]] %s600_s10  ;;  %s602_s11 = smov [#allocation19]  }
  0x22   :  { %165 = dma.general %s145_s26, 64, %s147_s28, %s601_s0, %s602_s11, [#allocation20], %s496_s9, 0  }
  0x23   :  { %176 = vsyncadd [#allocation10], 192  ;;  %s186_s2 = sld [smem:[#allocation0]]   ;;  %s194_s14 = sshll.u32 %s684_s3, 4  ;;  %s195_s14 = int_to_ptr.hbm [resolvable:$true] %s194_s14 }
  0x24   :  { %s603_s15 = smov [#allocation9]   ;;  %s604_s17 = smov 32  }
  0x25   :  { %s196_s16 = sshll.u32 %s603_s15, 4  ;;  %203 = sst [smem:[#allocation22]] %s604_s17  ;;  %s197_s16 = int_to_ptr.vmem [resolvable:$true] %s196_s16 }
  0x26   :  { %s605_s18 = smov 128   ;;  %s606_s20 = smov 1  }
  0x27   :  { %205 = sst [smem:[#allocation22 + $0x1]] %s605_s18  ;;  %s607_s22 = smov 2  }
  0x28   :  { %207 = sst [smem:[#allocation22 + $0x2]] %s606_s20  ;;  %s608_s23 = smov [#allocation10]  }
  0x29   :  { %s497_s19 = sshll.u32 %s186_s2, 26  ;;  %209 = sst [smem:[#allocation22 + $0x3]] %s604_s17 }
  0x2a   :  { %s498_s21 = sadd.s32 134217728, %s497_s19  ;;  %211 = sst [smem:[#allocation22 + $0x4]] %s604_s17 }
  0x2b   :  { %213 = sst [smem:[#allocation22 + $0x5]] %s607_s22  ;;  %s609_s1 = smov [#allocation21]  }
  0x2c   :  { %215 = dma.general %s195_s14, 64, %s197_s16, %s608_s23, %s609_s1, [#allocation22], %s498_s21, 0  }
  0x2d   :  { %226 = vsyncadd [#allocation10], 576  ;;  %s236_s3 = sld [smem:[#allocation0]]   ;;  %s244_s26 = sshll.u32 %s685_s4, 4  ;;  %s245_s26 = int_to_ptr.hbm [resolvable:$true] %s244_s26 }
  0x2e   :  { %s610_s27 = smov [#allocation11]   ;;  %s611_s29 = smov 32  }
  0x2f   :  { %s246_s28 = sshll.u32 %s610_s27, 4  ;;  %253 = sst [smem:[#allocation24]] %s611_s29  ;;  %s247_s28 = int_to_ptr.vmem [resolvable:$true] %s246_s28 }
  0x30   :  { %s612_s30 = smov 128   ;;  %s613_s8 = smov 1  }
  0x31   :  { %255 = sst [smem:[#allocation24 + $0x1]] %s612_s30  ;;  %s614_s10 = smov 2  }
  0x32   :  { %257 = sst [smem:[#allocation24 + $0x2]] %s613_s8  ;;  %s615_s0 = smov [#allocation10]  }
  0x33   :  { %s499_s7 = sshll.u32 %s236_s3, 26  ;;  %259 = sst [smem:[#allocation24 + $0x3]] %s611_s29 }
  0x34   :  { %s500_s9 = sadd.s32 134217728, %s499_s7  ;;  %261 = sst [smem:[#allocation24 + $0x4]] %s611_s29 }
  0x35   :  { %263 = sst [smem:[#allocation24 + $0x5]] %s614_s10  ;;  %s616_s11 = smov [#allocation23]  }
  0x36   :  { %265 = dma.general %s245_s26, 192, %s247_s28, %s615_s0, %s616_s11, [#allocation24], %s500_s9, 0  }
  0x37   :  { %276 = vsyncadd [#allocation13], 576  ;;  %s286_s4 = sld [smem:[#allocation0]]   ;;  %s294_s13 = sshll.u32 %s686_s5, 4  ;;  %s295_s13 = int_to_ptr.hbm [resolvable:$true] %s294_s13 }
  0x38   :  { %s617_s14 = smov [#allocation12]   ;;  %s618_s16 = smov 32  }
  0x39   :  { %s296_s15 = sshll.u32 %s617_s14, 4  ;;  %303 = sst [smem:[#allocation26]] %s618_s16  ;;  %s297_s15 = int_to_ptr.vmem [resolvable:$true] %s296_s15 }
  0x3a   :  { %s619_s17 = smov 128   ;;  %s620_s19 = smov 1  }
  0x3b   :  { %305 = sst [smem:[#allocation26 + $0x1]] %s619_s17  ;;  %s621_s21 = smov 2  }
  0x3c   :  { %307 = sst [smem:[#allocation26 + $0x2]] %s620_s19  ;;  %s622_s22 = smov [#allocation13]  }
  0x3d   :  { %s501_s18 = sshll.u32 %s286_s4, 26  ;;  %309 = sst [smem:[#allocation26 + $0x3]] %s618_s16 }
  0x3e   :  { %s502_s20 = sadd.s32 134217728, %s501_s18  ;;  %311 = sst [smem:[#allocation26 + $0x4]] %s618_s16 }
  0x3f   :  { %313 = sst [smem:[#allocation26 + $0x5]] %s621_s21  ;;  %s623_s23 = smov [#allocation25]  }
  0x40   :  { %315 = dma.general %s295_s13, 192, %s297_s15, %s622_s22, %s623_s23, [#allocation26], %s502_s20, 0  }
  0x41   :  { %572 = dma.done.wait [#allocation4], 256  }
  0x42   :  { %573 = vsyncadd [#allocation4], 4294967040 }
  0x43   :  { %574 = dma.done.wait [#allocation7], 512  }
  0x44   :  { %575 = vsyncadd [#allocation7], 4294966784 }
  0x45   :  { %576 = dma.done.wait [#allocation10], 1024  }
  0x46   :  { %577 = vsyncadd [#allocation10], 4294966272 }
  0x47   :  { %578 = dma.done.wait [#allocation13], 768  }
  0x48   :  { %579 = vsyncadd [#allocation13], 4294966528  ;;  %v383_v0 = vld [vmem:[#allocation6] sm:$0xff]  ;;  %v384_v1 = vld [vmem:[#allocation6 + $0x8] sm:$0xff]  ;;  %v434_v33 = vlaneseq  ;;  %s624_s5 = smov [#allocation14]   ;;  %s466_s25 = sshll.u32 %s687_s6, 4  ;;  %s467_s25 = int_to_ptr.hbm [resolvable:$true] %s466_s25 }
  0x49   :  { %v385_v2 = vld [vmem:[#allocation3] sm:$0xff]  ;;  %v386_v3 = vld [vmem:[#allocation3 + $0x8] sm:$0xff]  ;;  %v393_v5 = vld [vmem:[#allocation12] sm:$0xff]  ;;  %s464_s1 = sshll.u32 %s624_s5, 4  ;;  %s465_s1 = int_to_ptr.vmem [resolvable:$true] %s464_s1 }
  0x4a   :  { %v387_v4 = vsub.f32 %v383_v0, %v385_v2  ;;  %v394_v6 = vld [vmem:[#allocation12 + $0x18] sm:$0xff]  ;;  %v395_v7 = vld [vmem:[#allocation11] sm:$0xff]  ;;  %v388_v8 = vsub.f32 %v384_v1, %v386_v3  ;;  %v396_v9 = vld [vmem:[#allocation11 + $0x18] sm:$0xff]  ;;  %v435_v43 = vshrl.u32 %v434_v33, 7 }
  0x4b   :  { %v397_v10 = vsub.f32 %v393_v5, %v395_v7  ;;  %v402_v11 = vld [vmem:[#allocation12 + $0x8] sm:$0xff]  ;;  %v403_v12 = vld [vmem:[#allocation12 + $0x20] sm:$0xff]  ;;  %v398_v13 = vsub.f32 %v394_v6, %v396_v9  ;;  %v405_v14 = vld [vmem:[#allocation11 + $0x8] sm:$0xff] }
  0x4c   :  { %v406_v15 = vld [vmem:[#allocation11 + $0x20] sm:$0xff]  ;;  %v407_v17 = vsub.f32 %v402_v11, %v405_v14  ;;  %v415_v20 = vld [vmem:[#allocation12 + $0x28] sm:$0xff]  ;;  %v417_v21 = vld [vmem:[#allocation11 + $0x10] sm:$0xff]  ;;  %v389_v22 = vand.u32 2147483647, %v387_v4  ;;  %vm438_vm0 = vcmp.lt.s32.totalorder %v435_v43, 2 }
  0x4d   :  { %v399_v16 = vand.u32 2147483647, %v397_v10  ;;  %v408_v18 = vsub.f32 %v403_v12, %v406_v15  ;;  %v414_v19 = vld [vmem:[#allocation12 + $0x10] sm:$0xff]  ;;  %v400_v23 = vand.u32 2147483647, %v398_v13  ;;  %v418_v24 = vld [vmem:[#allocation11 + $0x28] sm:$0xff] }
  0x4e   :  { %v419_v25 = vsub.f32 %v414_v19, %v417_v21  ;;  %v390_v26 = vand.u32 2147483647, %v388_v8  ;;  %v409_v27 = vand.u32 2147483647, %v407_v17  ;;  %v420_v29 = vsub.f32 %v415_v20, %v418_v24  ;;  %v381_v30 = vld [vmem:[#allocation8] sm:$0xff]  ;;  %v382_v31 = vld [vmem:[#allocation8 + $0x8] sm:$0xff] }
  0x4f   :  { %v410_v28 = vand.u32 2147483647, %v408_v18  ;;  %v425_v37 = vld [vmem:[#allocation9] sm:$0xff]  ;;  %v426_v38 = vld [vmem:[#allocation9 + $0x8] sm:$0xff]  ;;  %v391_v39 = vmul.f32 %v389_v22, %v381_v30 }
  0x50   :  { %v421_v32 = vand.u32 2147483647, %v419_v25  ;;  %v411_v34 = vadd.f32 %v409_v27, %v399_v16  ;;  %v422_v36 = vand.u32 2147483647, %v420_v29  ;;  %v392_v40 = vmul.f32 %v390_v26, %v382_v31 }
  0x51   :  { %v412_v35 = vadd.f32 %v410_v28, %v400_v23 }
  0x52   :  { %v423_v41 = vadd.f32 %v421_v32, %v411_v34 }
  0x53   :  { %v424_v42 = vadd.f32 %v422_v36, %v412_v35 }
  0x54   :  { %v427_v44 = vmul.f32 %v425_v37, %v423_v41 }
  0x55   :  { %v428_v45 = vmul.f32 %v426_v38, %v424_v42 }
  0x56   :  { %v429_v46 = vadd.f32 %v427_v44, %v391_v39 }
  0x57   :  { %v430_v47 = vadd.f32 %v428_v45, %v392_v40 }
  0x59   :  { %v431_v48 = vadd.f32 %v430_v47, %v429_v46 }
  0x5b   :  { %v439_v49 = vsel %vm438_vm0, %v431_v48, 0.0 }
  0x5c   :  { %447 = vadd.xlane.f32.xlu0 %v439_v49 }
  0xcf   :  { %v448_v50 = vpop.xlane.xlu0 %447 }
  0xd0   :  { %v449_v51 = vrot.slane %v448_v50, 4 }
  0xd2   :  { %v450_v52 = vadd.f32 %v449_v51, %v448_v50 }
  0xd4   :  { %v451_v53 = vrot.slane %v450_v52, 2 }
  0xd6   :  { %v452_v54 = vadd.f32 %v451_v53, %v450_v52 }
  0xd8   :  { %v453_v55 = vrot.slane %v452_v54, 1 }
  0xda   :  { %v454_v56 = vadd.f32 %v453_v55, %v452_v54 }
  0xdc   :  { %503 = vpush %v454_v56 }
 0x10d   :  { %s504_s26 = spop %503 }
 0x10e   :  { %v456_v57 = vstv %s504_s26 }
 0x10f   :  { %458 = vst [vmem:[#allocation14] sm:$0x1] %v456_v57 }
 0x110   :  { %469 = dma.vmem_to_hbm [thread:$0]  %s465_s1, 16, %s467_s25, [#allocation5]  }
 0x111   :  { %580 = dma.done.wait [#allocation5], 16  }
 0x112   :  { %581 = vsyncadd [#allocation5], 4294967280 }
 0x113   :  { %474 = vsyncpa [#allocation4], 1 }
 0x114   :  { %475 = vsyncpa [#allocation7], 1 }
 0x115   :  { %476 = vsyncpa [#allocation10], 1 }
 0x116   :  { %477 = vsyncpa [#allocation13], 1 }
 0x117   :  { %478 = vsyncpa [#allocation5], 1 }

</bundles_post_ra>
